<compile_context>
chip_gen: v5e
topology: v5e:2x2
jax: 0.10.0
libtpu: 0.0.40
codegen_flags: <defaults>
</compile_context>

<pallas_src>
import functools

import jax
import jax.numpy as jnp
from jax.experimental import pallas as pl
from jax.experimental.pallas import tpu as pltpu


def qnet_kernel(obs_ref, act_ref,
                w1o_ref, w1a_ref, b1_ref,
                w2_ref, b2_ref,
                w3_ref, b3_ref,
                w4t_ref, b4_ref,
                o_ref):
    """Full MLP (3x Linear+ReLU, 1x Linear) on one row-tile of the batch."""
    # Layer 1: obs/act concat fused into two matmuls (f32 accumulation).
    h = (jnp.dot(obs_ref[...], w1o_ref[...], preferred_element_type=jnp.float32)
         + jnp.dot(act_ref[...], w1a_ref[...], preferred_element_type=jnp.float32)
         + b1_ref[...])
    h = jnp.maximum(h, 0.0)
    # Layers 2-3: square (H, H) MXU matmuls; cast the activations to the weight
    # dtype (no-op in f32, bf16 when use_bf16 is enabled).
    h = jnp.dot(h.astype(w2_ref.dtype), w2_ref[...],
                preferred_element_type=jnp.float32) + b2_ref[...]
    h = jnp.maximum(h, 0.0)
    h = jnp.dot(h.astype(w3_ref.dtype), w3_ref[...],
                preferred_element_type=jnp.float32) + b3_ref[...]
    h = jnp.maximum(h, 0.0)
    # Layer 4 (H -> 1): VPU multiply + lane reduce against the (1, H) weight
    # row -- no N=1 MXU matmul and no 128-lane padded output/writeback.
    q = jnp.sum(h * w4t_ref[...].astype(jnp.float32), axis=-1, keepdims=True)
    q = q + b4_ref[...]
    o_ref[...] = q.astype(o_ref.dtype)


def init_qnetwork_params(key, obs_dim, act_dim, hidden_size=32):
    """Deterministic init mimicking torch.nn.Linear default (U[-1/sqrt(fan_in), +])."""
    dims = [obs_dim + act_dim, hidden_size, hidden_size, hidden_size, 1]
    params = []
    for i in range(4):
        fan_in, fan_out = dims[i], dims[i + 1]
        key, kw, kb = jax.random.split(key, 3)
        bound = 1.0 / jnp.sqrt(float(fan_in))
        # stored as (in, out); bias as (1, out) for 2-D VMEM friendliness
        w = jax.random.uniform(kw, (fan_in, fan_out), jnp.float32, -bound, bound)
        b = jax.random.uniform(kb, (1, fan_out), jnp.float32, -bound, bound)
        params += [w, b]
    return tuple(params)


def _round_up(x, m):
    return ((x + m - 1) // m) * m


def _pad_to(a, shape):
    return jnp.pad(a, [(0, s - d) for s, d in zip(shape, a.shape)])


def prepare_qnetwork_params(params, obs_dim, *, use_bf16=False):
    """One-time split/pad of the raw (in, out) weights into kernel-ready form.

    Keeps the per-call jitted forward free of pad/slice ops (latency win for
    small batches).  Zero-padding hidden 32 -> 128 is exact.
    """
    w1, b1, w2, b2, w3, b3, w4, b4 = params
    hidden = w1.shape[1]
    H = max(128, _round_up(hidden, 128))
    wdt = jnp.bfloat16 if use_bf16 else jnp.float32

    w1o = _pad_to(w1[:obs_dim], (obs_dim, H)).astype(wdt)
    w1a = _pad_to(w1[obs_dim:], (w1.shape[0] - obs_dim, H)).astype(wdt)
    b1p = _pad_to(b1, (1, H)).astype(jnp.float32)
    w2p = _pad_to(w2, (H, H)).astype(wdt)
    b2p = _pad_to(b2, (1, H)).astype(jnp.float32)
    w3p = _pad_to(w3, (H, H)).astype(wdt)
    b3p = _pad_to(b3, (1, H)).astype(jnp.float32)
    w4t = _pad_to(w4.T, (1, H)).astype(wdt)          # (1, H) weight row
    b4p = b4.astype(jnp.float32).reshape(1, 1)        # (1, 1) scalar bias
    return (w1o, w1a, b1p, w2p, b2p, w3p, b3p, w4t, b4p)


def _pick_block_rows(n, block_rows):
    """Row-tile choice: big tiles to amortize per-step overhead, capped for
    small batches, and an even tile count once there is enough work so v7x's
    two TensorCores (fed by the parallel grid axis) split the batch evenly."""
    n8 = _round_up(n, 8)
    bm = min(block_rows, n8)
    if n8 >= 256:                      # enough work to feed both v7x cores
        tiles = pl.cdiv(n, bm)
        if tiles < 2:
            tiles = 2
        elif tiles % 2:
            tiles += 1
        bm = _round_up(pl.cdiv(n, tiles), 8)
    return max(bm, 8)


@functools.partial(jax.jit, static_argnames=("block_rows",))
def qnetwork_forward(prepared_params, obs, act, *, block_rows=2048):
    w1o, w1a, b1p, w2p, b2p, w3p, b3p, w4t, b4p = prepared_params

    reshape = obs.ndim == 3
    if reshape:
        batch_size, seq_len, _ = obs.shape
        obs = obs.reshape(-1, obs.shape[-1])
        act = act.reshape(-1, act.shape[-1])
    obs = obs.astype(w1o.dtype)
    act = act.astype(w1a.dtype)
    n, obs_dim = obs.shape
    act_dim = act.shape[-1]

    bm = _pick_block_rows(n, block_rows)
    grid = (pl.cdiv(n, bm),)

    # Constant (grid-invariant) weight/bias blocks.
    full = lambda a: pl.BlockSpec(a.shape, lambda i: (0, 0))

    out = pl.pallas_call(
        qnet_kernel,
        out_shape=jax.ShapeDtypeStruct((n, 1), jnp.float32),
        grid=grid,
        in_specs=[
            pl.BlockSpec((bm, obs_dim), lambda i: (i, 0)),
            pl.BlockSpec((bm, act_dim), lambda i: (i, 0)),
            full(w1o), full(w1a), full(b1p),
            full(w2p), full(b2p),
            full(w3p), full(b3p),
            full(w4t), full(b4p),
        ],
        out_specs=pl.BlockSpec((bm, 1), lambda i: (i, 0)),
        compiler_params=pltpu.CompilerParams(
            dimension_semantics=("parallel",)),
    )(obs, act, w1o, w1a, b1p, w2p, b2p, w3p, b3p, w4t, b4p)

    if reshape:
        out = out.reshape(batch_size, seq_len, 1)
    return out


def qnetwork_ref(params, obs, act):
    """Plain-JAX reference for correctness checking."""
    reshape = obs.ndim == 3
    if reshape:
        b, s, _ = obs.shape
        obs = obs.reshape(-1, obs.shape[-1])
        act = act.reshape(-1, act.shape[-1])
    x = jnp.concatenate([obs, act], axis=-1)
    w1, b1, w2, b2, w3, b3, w4, b4 = params
    h = jax.nn.relu(x @ w1 + b1)
    h = jax.nn.relu(h @ w2 + b2)
    h = jax.nn.relu(h @ w3 + b3)
    q = h @ w4 + b4
    if reshape:
        q = q.reshape(b, s, 1)
    return q


if __name__ == "__main__":
    obs_dim, act_dim, hidden = 12, 4, 32
    batch, seq = 2, 8

    key = jax.random.PRNGKey(0)
    kp, ko, ka, ko2, ka2 = jax.random.split(key, 5)
    params = init_qnetwork_params(kp, obs_dim, act_dim, hidden)
    prepped = prepare_qnetwork_params(params, obs_dim)   # f32 (tight tolerance)

    # 3-D (batch, seq, dim) case — exercises the view/reshape path of the module.
    obs = jax.random.normal(ko, (batch, seq, obs_dim), jnp.float32)
    act = jax.random.normal(ka, (batch, seq, act_dim), jnp.float32)

    q = jax.block_until_ready(qnetwork_forward(prepped, obs, act))
    q_ref = qnetwork_ref(params, obs, act)
    assert q.shape == (batch, seq, 1), q.shape
    assert jnp.allclose(q, q_ref, atol=1e-5, rtol=1e-5), "mismatch vs reference (3-D)"

    # 2-D (batch, dim) case — partial boundary block (n=2 rows in an 8-row tile).
    q2 = jax.block_until_ready(qnetwork_forward(prepped, obs[:, 0], act[:, 0]))
    assert q2.shape == (batch, 1), q2.shape
    assert jnp.allclose(q2, q_ref[:, 0], atol=1e-5, rtol=1e-5), "mismatch vs reference (2-D)"

    # Medium 2-D case — exercises the multi-tile grid (even tile count for v7x)
    # plus a ragged tail.
    n_big = 300
    obs_b = jax.random.normal(ko2, (n_big, obs_dim), jnp.float32)
    act_b = jax.random.normal(ka2, (n_big, act_dim), jnp.float32)
    q3 = jax.block_until_ready(qnetwork_forward(prepped, obs_b, act_b))
    q3_ref = qnetwork_ref(params, obs_b, act_b)
    assert q3.shape == (n_big, 1), q3.shape
    assert jnp.allclose(q3, q3_ref, atol=1e-5, rtol=1e-5), "mismatch vs reference (multi-tile)"

    print("KERNEL_OK")
</pallas_src>

<mosaic_0001>
module attributes {stable_mosaic.version = 11 : i64} {
  func.func @qnet_kernel(%arg0: i32, %arg1: memref<16x12xf32, #tpu.memory_space<vmem>>, %arg2: memref<16x4xf32, #tpu.memory_space<vmem>>, %arg3: memref<12x128xf32, #tpu.memory_space<vmem>>, %arg4: memref<4x128xf32, #tpu.memory_space<vmem>>, %arg5: memref<1x128xf32, #tpu.memory_space<vmem>>, %arg6: memref<128x128xf32, #tpu.memory_space<vmem>>, %arg7: memref<1x128xf32, #tpu.memory_space<vmem>>, %arg8: memref<128x128xf32, #tpu.memory_space<vmem>>, %arg9: memref<1x128xf32, #tpu.memory_space<vmem>>, %arg10: memref<1x128xf32, #tpu.memory_space<vmem>>, %arg11: memref<1x1xf32, #tpu.memory_space<vmem>>, %arg12: memref<16x1xf32, #tpu.memory_space<vmem>>) attributes {dimension_semantics = [#tpu.dimension_semantics<parallel>], iteration_bounds = array<i64: 1>, scalar_prefetch = 0 : i64, scratch_operands = 0 : i64, tpu.core_type = #tpu.core_type<tc>, window_params = [{transform_indices = @transform_0, window_bounds = array<i64: 16, 12>}, {transform_indices = @transform_1, window_bounds = array<i64: 16, 4>}, {pipeline_mode = #tpu.pipeline_mode<synchronous>, transform_indices = @transform_2, window_bounds = array<i64: 12, 128>}, {pipeline_mode = #tpu.pipeline_mode<synchronous>, transform_indices = @transform_3, window_bounds = array<i64: 4, 128>}, {pipeline_mode = #tpu.pipeline_mode<synchronous>, transform_indices = @transform_4, window_bounds = array<i64: 1, 128>}, {pipeline_mode = #tpu.pipeline_mode<synchronous>, transform_indices = @transform_5, window_bounds = array<i64: 128, 128>}, {pipeline_mode = #tpu.pipeline_mode<synchronous>, transform_indices = @transform_6, window_bounds = array<i64: 1, 128>}, {pipeline_mode = #tpu.pipeline_mode<synchronous>, transform_indices = @transform_7, window_bounds = array<i64: 128, 128>}, {pipeline_mode = #tpu.pipeline_mode<synchronous>, transform_indices = @transform_8, window_bounds = array<i64: 1, 128>}, {pipeline_mode = #tpu.pipeline_mode<synchronous>, transform_indices = @transform_9, window_bounds = array<i64: 1, 128>}, {pipeline_mode = #tpu.pipeline_mode<synchronous>, transform_indices = @transform_10, window_bounds = array<i64: 1, 1>}, {transform_indices = @transform_11, window_bounds = array<i64: 16, 1>}]} {
    %c0 = arith.constant 0 : index
    %c0_0 = arith.constant 0 : index
    %0 = vector.load %arg1[%c0, %c0_0] : memref<16x12xf32, #tpu.memory_space<vmem>>, vector<16x12xf32>
    %c0_1 = arith.constant 0 : index
    %c0_2 = arith.constant 0 : index
    %1 = vector.load %arg3[%c0_1, %c0_2] : memref<12x128xf32, #tpu.memory_space<vmem>>, vector<12x128xf32>
    %cst = arith.constant dense<0.000000e+00> : vector<16x128xf32>
    %2 = tpu.matmul %0, %1, %cst {dimension_numbers = #tpu.dot_dimension_numbers<[1], [0], [0], [1], [0, 0, 1, 1], [], []>} : vector<16x12xf32>, vector<12x128xf32>, vector<16x128xf32> -> vector<16x128xf32>
    %c0_3 = arith.constant 0 : index
    %c0_4 = arith.constant 0 : index
    %3 = vector.load %arg2[%c0_3, %c0_4] : memref<16x4xf32, #tpu.memory_space<vmem>>, vector<16x4xf32>
    %c0_5 = arith.constant 0 : index
    %c0_6 = arith.constant 0 : index
    %4 = vector.load %arg4[%c0_5, %c0_6] : memref<4x128xf32, #tpu.memory_space<vmem>>, vector<4x128xf32>
    %cst_7 = arith.constant dense<0.000000e+00> : vector<16x128xf32>
    %5 = tpu.matmul %3, %4, %cst_7 {dimension_numbers = #tpu.dot_dimension_numbers<[1], [0], [0], [1], [0, 0, 1, 1], [], []>} : vector<16x4xf32>, vector<4x128xf32>, vector<16x128xf32> -> vector<16x128xf32>
    %6 = arith.addf %2, %5 : vector<16x128xf32>
    %c0_8 = arith.constant 0 : index
    %c0_9 = arith.constant 0 : index
    %7 = vector.load %arg5[%c0_8, %c0_9] : memref<1x128xf32, #tpu.memory_space<vmem>>, vector<1x128xf32>
    %8 = vector.broadcast %7 : vector<1x128xf32> to vector<16x128xf32>
    %9 = arith.addf %6, %8 : vector<16x128xf32>
    %cst_10 = arith.constant 0.000000e+00 : f32
    %10 = vector.broadcast %cst_10 : f32 to vector<16x128xf32>
    %11 = arith.maximumf %9, %10 : vector<16x128xf32>
    %c0_11 = arith.constant 0 : index
    %c0_12 = arith.constant 0 : index
    %12 = vector.load %arg6[%c0_11, %c0_12] : memref<128x128xf32, #tpu.memory_space<vmem>>, vector<128x128xf32>
    %cst_13 = arith.constant dense<0.000000e+00> : vector<16x128xf32>
    %13 = tpu.matmul %11, %12, %cst_13 {dimension_numbers = #tpu.dot_dimension_numbers<[1], [0], [0], [1], [0, 0, 1, 1], [], []>} : vector<16x128xf32>, vector<128x128xf32>, vector<16x128xf32> -> vector<16x128xf32>
    %c0_14 = arith.constant 0 : index
    %c0_15 = arith.constant 0 : index
    %14 = vector.load %arg7[%c0_14, %c0_15] : memref<1x128xf32, #tpu.memory_space<vmem>>, vector<1x128xf32>
    %15 = vector.broadcast %14 : vector<1x128xf32> to vector<16x128xf32>
    %16 = arith.addf %13, %15 : vector<16x128xf32>
    %cst_16 = arith.constant 0.000000e+00 : f32
    %17 = vector.broadcast %cst_16 : f32 to vector<16x128xf32>
    %18 = arith.maximumf %16, %17 : vector<16x128xf32>
    %c0_17 = arith.constant 0 : index
    %c0_18 = arith.constant 0 : index
    %19 = vector.load %arg8[%c0_17, %c0_18] : memref<128x128xf32, #tpu.memory_space<vmem>>, vector<128x128xf32>
    %cst_19 = arith.constant dense<0.000000e+00> : vector<16x128xf32>
    %20 = tpu.matmul %18, %19, %cst_19 {dimension_numbers = #tpu.dot_dimension_numbers<[1], [0], [0], [1], [0, 0, 1, 1], [], []>} : vector<16x128xf32>, vector<128x128xf32>, vector<16x128xf32> -> vector<16x128xf32>
    %c0_20 = arith.constant 0 : index
    %c0_21 = arith.constant 0 : index
    %21 = vector.load %arg9[%c0_20, %c0_21] : memref<1x128xf32, #tpu.memory_space<vmem>>, vector<1x128xf32>
    %22 = vector.broadcast %21 : vector<1x128xf32> to vector<16x128xf32>
    %23 = arith.addf %20, %22 : vector<16x128xf32>
    %cst_22 = arith.constant 0.000000e+00 : f32
    %24 = vector.broadcast %cst_22 : f32 to vector<16x128xf32>
    %25 = arith.maximumf %23, %24 : vector<16x128xf32>
    %c0_23 = arith.constant 0 : index
    %c0_24 = arith.constant 0 : index
    %26 = vector.load %arg10[%c0_23, %c0_24] : memref<1x128xf32, #tpu.memory_space<vmem>>, vector<1x128xf32>
    %27 = vector.broadcast %26 : vector<1x128xf32> to vector<16x128xf32>
    %28 = arith.mulf %25, %27 : vector<16x128xf32>
    %cst_25 = arith.constant dense<0.000000e+00> : vector<16xf32>
    %29 = vector.multi_reduction <add>, %28, %cst_25 [1] : vector<16x128xf32> to vector<16xf32>
    %30 = vector.shape_cast %29 : vector<16xf32> to vector<16x1xf32>
    %c0_26 = arith.constant 0 : index
    %c0_27 = arith.constant 0 : index
    %31 = vector.load %arg11[%c0_26, %c0_27] : memref<1x1xf32, #tpu.memory_space<vmem>>, vector<1x1xf32>
    %32 = vector.broadcast %31 : vector<1x1xf32> to vector<16x1xf32>
    %33 = arith.addf %30, %32 : vector<16x1xf32>
    %c0_28 = arith.constant 0 : index
    %c0_29 = arith.constant 0 : index
    %34 = vector.load %arg12[%c0_28, %c0_29] : memref<16x1xf32, #tpu.memory_space<vmem>>, vector<16x1xf32>
    tpu.vector_store %arg12[%c0_28, %c0_29], %33 {strides = array<i32>} : memref<16x1xf32, #tpu.memory_space<vmem>>, vector<16x1xf32>,
    return
  }
  func.func @transform_0(%arg0: i32) -> (i32, i32) {
    %c0_i32 = arith.constant 0 : i32
    %c0_i32_0 = arith.constant 0 : i32
    return %arg0, %c0_i32 : i32, i32
  }
  func.func @transform_1(%arg0: i32) -> (i32, i32) {
    %c0_i32 = arith.constant 0 : i32
    %c0_i32_0 = arith.constant 0 : i32
    return %arg0, %c0_i32 : i32, i32
  }
  func.func @transform_2(%arg0: i32) -> (i32, i32) {
    %c0_i32 = arith.constant 0 : i32
    %c0_i32_0 = arith.constant 0 : i32
    %c0_i32_1 = arith.constant 0 : i32
    return %c0_i32, %c0_i32_0 : i32, i32
  }
  func.func @transform_3(%arg0: i32) -> (i32, i32) {
    %c0_i32 = arith.constant 0 : i32
    %c0_i32_0 = arith.constant 0 : i32
    %c0_i32_1 = arith.constant 0 : i32
    return %c0_i32, %c0_i32_0 : i32, i32
  }
  func.func @transform_4(%arg0: i32) -> (i32, i32) {
    %c0_i32 = arith.constant 0 : i32
    %c0_i32_0 = arith.constant 0 : i32
    %c0_i32_1 = arith.constant 0 : i32
    return %c0_i32, %c0_i32_0 : i32, i32
  }
  func.func @transform_5(%arg0: i32) -> (i32, i32) {
    %c0_i32 = arith.constant 0 : i32
    %c0_i32_0 = arith.constant 0 : i32
    %c0_i32_1 = arith.constant 0 : i32
    return %c0_i32, %c0_i32_0 : i32, i32
  }
  func.func @transform_6(%arg0: i32) -> (i32, i32) {
    %c0_i32 = arith.constant 0 : i32
    %c0_i32_0 = arith.constant 0 : i32
    %c0_i32_1 = arith.constant 0 : i32
    return %c0_i32, %c0_i32_0 : i32, i32
  }
  func.func @transform_7(%arg0: i32) -> (i32, i32) {
    %c0_i32 = arith.constant 0 : i32
    %c0_i32_0 = arith.constant 0 : i32
    %c0_i32_1 = arith.constant 0 : i32
    return %c0_i32, %c0_i32_0 : i32, i32
  }
  func.func @transform_8(%arg0: i32) -> (i32, i32) {
    %c0_i32 = arith.constant 0 : i32
    %c0_i32_0 = arith.constant 0 : i32
    %c0_i32_1 = arith.constant 0 : i32
    return %c0_i32, %c0_i32_0 : i32, i32
  }
  func.func @transform_9(%arg0: i32) -> (i32, i32) {
    %c0_i32 = arith.constant 0 : i32
    %c0_i32_0 = arith.constant 0 : i32
    %c0_i32_1 = arith.constant 0 : i32
    return %c0_i32, %c0_i32_0 : i32, i32
  }
  func.func @transform_10(%arg0: i32) -> (i32, i32) {
    %c0_i32 = arith.constant 0 : i32
    %c0_i32_0 = arith.constant 0 : i32
    %c0_i32_1 = arith.constant 0 : i32
    return %c0_i32, %c0_i32_0 : i32, i32
  }
  func.func @transform_11(%arg0: i32) -> (i32, i32) {
    %c0_i32 = arith.constant 0 : i32
    %c0_i32_0 = arith.constant 0 : i32
    return %arg0, %c0_i32 : i32, i32
  }
}

</mosaic_0001>

<bundles_post_ra>
// kernel: qnetwork_forward.1
= control target key start
LH: loop header
LB: loop body
LE: loop exit
PB: predicated region body
PF: predicated region fallthrough
CT: control target
= control target key end

     0   :  { %s522_s0 = inlined_call_operand.vmem [shape: f32[16,12], index: 0, kind: input, shape index: {}]   ;;  %s523_s1 = inlined_call_operand.vmem [shape: f32[16,4], index: 1, kind: input, shape index: {}]   ;;  %s524_s2 = inlined_call_operand.hbm [shape: f32[12,128], index: 2, kind: input, shape index: {}]   ;;  %s525_s3 = inlined_call_operand.vmem [shape: f32[4,128], index: 3, kind: input, shape index: {}]   ;;  %s526_s4 = inlined_call_operand.vmem [shape: f32[1,128], index: 4, kind: input, shape index: {}]   ;;  %s527_s5 = inlined_call_operand.hbm [shape: f32[128,128], index: 5, kind: input, shape index: {}]   ;;  %s528_s6 = inlined_call_operand.vmem [shape: f32[1,128], index: 6, kind: input, shape index: {}]   ;;  %s529_s7 = inlined_call_operand.hbm [shape: f32[128,128], index: 7, kind: input, shape index: {}]   ;;  %s530_s8 = inlined_call_operand.vmem [shape: f32[1,128], index: 8, kind: input, shape index: {}]   ;;  %s531_s9 = inlined_call_operand.vmem [shape: f32[1,128], index: 9, kind: input, shape index: {}]   ;;  %s532_s10 = inlined_call_operand.<no memory space> [shape: f32[1,1], index: 10, kind: input, shape index: {}]   ;;  %s533_s11 = inlined_call_operand.vmem [shape: f32[16,1], index: 11, kind: output, shape index: {}]  }
   0x1   :  { %v16_v0 = vstv %s532_s10 }
   0x2   :  { %17 = vst [vmem:[#allocation2] sm:$0x1] %v16_v0 }
   0x3   :  { %18 = vsyncpa [#allocation4], 0 }
   0x4   :  { %19 = vsyncpa [#allocation6], 0  ;;  %s45_s21 = sshll.u32 %s527_s5, 4  ;;  %s408_s22 = smov [#allocation5]   ;;  %s46_s21 = int_to_ptr.hbm [resolvable:$true] %s45_s21 }
   0x5   :  { %s47_s23 = sshll.u32 %s408_s22, 4  ;;  %s28_s26 = sshll.u32 %s524_s2, 4  ;;  %s48_s23 = int_to_ptr.vmem [resolvable:$true] %s47_s23  ;;  %s29_s26 = int_to_ptr.hbm [resolvable:$true] %s28_s26 }
   0x6   :  { %s409_s27 = smov 128   ;;  %s410_s28 = smov 8  }
   0x7   :  { %53 = dma.hbm_to_vmem [thread:$0]  %s46_s21, 2048, %s48_s23, [#allocation6], %s409_s27, %s409_s27, %s410_s28  }
   0x8   :  { %s411_s10 = smov [#allocation3]   ;;  %s60_s13 = sshll.u32 %s529_s7, 4  ;;  %s61_s13 = int_to_ptr.hbm [resolvable:$true] %s60_s13 }
   0x9   :  { %s30_s29 = sshll.u32 %s411_s10, 4  ;;  %s412_s5 = smov [#allocation7]   ;;  %s31_s29 = int_to_ptr.vmem [resolvable:$true] %s30_s29 }
   0xa   :  { %36 = dma.hbm_to_vmem [thread:$0]  %s29_s26, 256, %s31_s29, [#allocation4], %s409_s27, %s409_s27, %s410_s28  }
   0xb   :  { %s62_s14 = sshll.u32 %s412_s5, 4  ;;  %s63_s14 = int_to_ptr.vmem [resolvable:$true] %s62_s14 }
   0xc   :  { %68 = dma.hbm_to_vmem [thread:$0]  %s61_s13, 2048, %s63_s14, [#allocation6], %s409_s27, %s409_s27, %s410_s28  }
   0xd   :  { %404 = dma.done.wait [#allocation4], 256  }
   0xe   :  { %405 = vsyncadd [#allocation4], 4294967040 }
   0xf   :  { %406 = dma.done.wait [#allocation6], 4096  }
  0x10   :  { %407 = vsyncadd [#allocation6], 4294963200  ;;  %vm101_vm0 = vcmask 1043456   ;;  %vm94_vm1 = vcmask 31744   ;;  %v90_v1 = vld [vmem:[#allocation3 + $0x8] sm:$0xf] }
  0x11   :  { %v93_v2 = vld [vmem:[%s525_s3] sm:$0xf]  ;;  %287 = vmatpush.msk.msra.mxu1 %vm101_vm0, %v90_v1  ;;  %vm128_vm2 = vcmask 97280   ;;  %v184_v6 = vld [vmem:[#allocation5 + $0x78] sm:$0xff]  ;;  %v181_v10 = vld [vmem:[#allocation5 + $0x60] sm:$0xff]  ;;  %vm275_vm3 = vcmask 7168  }
  0x12   :  { %v89_v3 = vld [vmem:[#allocation3] sm:$0xff]  ;;  %284 = vmatpush.msk.msra.mxu0 %vm101_vm0, %v93_v2  ;;  %v182_v8 = vld [vmem:[#allocation5 + $0x68] sm:$0xff]  ;;  %290 = vmatpush.msra.mxu2 %v184_v6  ;;  %v180_v11 = vld [vmem:[#allocation5 + $0x58] sm:$0xff] }
  0x13   :  { %v91_v4 = vld [vmem:[%s523_s1] sm:$0xff]  ;;  %153 = vmatpush.msra.mxu1 %v89_v3  ;;  %v92_v9 = vld [vmem:[%s523_s1 + $0x8] sm:$0xff]  ;;  %v177_v15 = vld [vmem:[#allocation5 + $0x40] sm:$0xff] }
  0x14   :  { %v87_v5 = vld [vmem:[%s522_s0] sm:$0xff]  ;;  %285 = vmatmul.msk.f32.vlgmr.msra.gmra.mxu0 %vm94_vm1, %v91_v4  ;;  %v88_v12 = vld [vmem:[%s522_s0 + $0x8] sm:$0xff]  ;;  %v173_v19 = vld [vmem:[#allocation5 + $0x20] sm:$0xff] }
  0x15   :  { %v183_v7 = vld [vmem:[#allocation5 + $0x70] sm:$0xff]  ;;  %189 = vmatpush.msrb.mxu0 %v184_v6  ;;  %288 = vmatmul.msk.f32.vlgmr.msra.gmra.mxu1 %vm128_vm2, %v87_v5  ;;  %v178_v14 = vld [vmem:[#allocation5 + $0x48] sm:$0xff]  ;;  %v176_v16 = vld [vmem:[#allocation5 + $0x38] sm:$0xff] }
  0x16   :  { %291 = vmatpush.msra.mxu2 %v183_v7  ;;  %v179_v13 = vld [vmem:[#allocation5 + $0x50] sm:$0xff]  ;;  %v174_v18 = vld [vmem:[#allocation5 + $0x28] sm:$0xff]  ;;  %v172_v20 = vld [vmem:[#allocation5 + $0x18] sm:$0xff] }
  0x17   :  { %190 = vmatpush.msrb.mxu0 %v183_v7  ;;  %v175_v17 = vld [vmem:[#allocation5 + $0x30] sm:$0xff]  ;;  %v170_v22 = vld [vmem:[#allocation5 + $0x8] sm:$0xff]  ;;  %v169_v23 = vld [vmem:[#allocation5] sm:$0xff] }
  0x18   :  { %292 = vmatpush.msra.mxu2 %v182_v8  ;;  %v171_v21 = vld [vmem:[#allocation5 + $0x10] sm:$0xff]  ;;  %v229_v24 = vld [vmem:[#allocation7 + $0x78] sm:$0xff]  ;;  %v227_v26 = vld [vmem:[#allocation7 + $0x68] sm:$0xff] }
  0x19   :  { %191 = vmatpush.msrb.mxu0 %v182_v8  ;;  %v228_v25 = vld [vmem:[#allocation7 + $0x70] sm:$0xff]  ;;  %234 = vmatpush.msrb.mxu1 %v229_v24  ;;  %v226_v27 = vld [vmem:[#allocation7 + $0x60] sm:$0xff]  ;;  %v225_v28 = vld [vmem:[#allocation7 + $0x58] sm:$0xff] }
  0x1a   :  { %293 = vmatpush.msra.mxu2 %v181_v10  ;;  %306 = vmatpush.msra.mxu3 %v229_v24  ;;  %v224_v29 = vld [vmem:[#allocation7 + $0x50] sm:$0xff]  ;;  %v223_v30 = vld [vmem:[#allocation7 + $0x48] sm:$0xff]  ;;  %v222_v31 = vld [vmem:[#allocation7 + $0x40] sm:$0xff] }
  0x1b   :  { %192 = vmatpush.msrb.mxu0 %v181_v10  ;;  %235 = vmatpush.msrb.mxu1 %v228_v25  ;;  %v221_v32 = vld [vmem:[#allocation7 + $0x38] sm:$0xff]  ;;  %v327_v34 = vld [vmem:[%s526_s4] ss:$0 sm:$0xff]  ;;  %v220_v35 = vld [vmem:[#allocation7 + $0x30] sm:$0xff] }
  0x1c   :  { %286 = vmatmul.msk.f32.gmra.mxu0 %vm94_vm1, %v92_v9  ;;  %294 = vmatpush.msra.mxu2 %v180_v11  ;;  %v219_v38 = vld [vmem:[#allocation7 + $0x28] sm:$0xff]  ;;  %v218_v40 = vld [vmem:[#allocation7 + $0x20] sm:$0xff]  ;;  %v217_v42 = vld [vmem:[#allocation7 + $0x18] sm:$0xff] }
  0x1d   :  { %193 = vmatpush.msrb.mxu0 %v180_v11  ;;  %289 = vmatmul.msk.f32.gmra.mxu1 %vm128_vm2, %v88_v12  ;;  %v216_v48 = vld [vmem:[#allocation7 + $0x10] sm:$0xff]  ;;  %v215_v49 = vld [vmem:[#allocation7 + $0x8] sm:$0xff]  ;;  %v214_v50 = vld [vmem:[#allocation7] sm:$0xff] }
  0x1e   :  { %295 = vmatpush.msra.mxu2 %v179_v13  ;;  %307 = vmatpush.msra.mxu3 %v228_v25  ;;  %v328_v51 = vld [vmem:[%s528_s6] ss:$0 sm:$0xff] }
  0x1f   :  { %194 = vmatpush.msrb.mxu0 %v179_v13  ;;  %236 = vmatpush.msrb.mxu1 %v227_v26  ;;  %v329_v58 = vld [vmem:[%s530_s8] ss:$0 sm:$0xff] }
  0x20   :  { %296 = vmatpush.msra.mxu2 %v178_v14  ;;  %308 = vmatpush.msra.mxu3 %v227_v26  ;;  %v330_v61 = vld [vmem:[%s531_s9] ss:$0 sm:$0xff] }
  0x21   :  { %195 = vmatpush.msrb.mxu0 %v178_v14  ;;  %237 = vmatpush.msrb.mxu1 %v226_v27  ;;  %v331_v4 = vld [vmem:[#allocation2] ss:$0 sm:$0xff] }
  0x22   :  { %297 = vmatpush.msra.mxu2 %v177_v15  ;;  %309 = vmatpush.msra.mxu3 %v226_v27 }
  0x23   :  { %196 = vmatpush.msrb.mxu0 %v177_v15  ;;  %238 = vmatpush.msrb.mxu1 %v225_v28 }
  0x24   :  { %298 = vmatpush.msra.mxu2 %v176_v16  ;;  %310 = vmatpush.msra.mxu3 %v225_v28 }
  0x25   :  { %197 = vmatpush.msrb.mxu0 %v176_v16  ;;  %239 = vmatpush.msrb.mxu1 %v224_v29 }
  0x26   :  { %299 = vmatpush.msra.mxu2 %v175_v17  ;;  %311 = vmatpush.msra.mxu3 %v224_v29 }
  0x27   :  { %198 = vmatpush.msrb.mxu0 %v175_v17  ;;  %240 = vmatpush.msrb.mxu1 %v223_v30 }
  0x28   :  { %300 = vmatpush.msra.mxu2 %v174_v18  ;;  %312 = vmatpush.msra.mxu3 %v223_v30 }
  0x29   :  { %199 = vmatpush.msrb.mxu0 %v174_v18  ;;  %241 = vmatpush.msrb.mxu1 %v222_v31 }
  0x2a   :  { %301 = vmatpush.msra.mxu2 %v173_v19  ;;  %313 = vmatpush.msra.mxu3 %v222_v31 }
  0x2b   :  { %200 = vmatpush.msrb.mxu0 %v173_v19  ;;  %242 = vmatpush.msrb.mxu1 %v221_v32 }
  0x2c   :  { %302 = vmatpush.msra.mxu2 %v172_v20  ;;  %314 = vmatpush.msra.mxu3 %v221_v32 }
  0x2d   :  { %201 = vmatpush.msrb.mxu0 %v172_v20  ;;  %243 = vmatpush.msrb.mxu1 %v220_v35 }
  0x2e   :  { %303 = vmatpush.msra.mxu2 %v171_v21  ;;  %315 = vmatpush.msra.mxu3 %v220_v35 }
  0x2f   :  { %202 = vmatpush.msrb.mxu0 %v171_v21  ;;  %244 = vmatpush.msrb.mxu1 %v219_v38 }
  0x30   :  { %304 = vmatpush.msra.mxu2 %v170_v22  ;;  %316 = vmatpush.msra.mxu3 %v219_v38 }
  0x31   :  { %203 = vmatpush.msrb.mxu0 %v170_v22  ;;  %245 = vmatpush.msrb.mxu1 %v218_v40 }
  0x32   :  { %305 = vmatpush.msra.mxu2 %v169_v23  ;;  %317 = vmatpush.msra.mxu3 %v218_v40 }
  0x33   :  { %204 = vmatpush.msrb.mxu0 %v169_v23  ;;  %246 = vmatpush.msrb.mxu1 %v217_v42 }
  0x34   :  { %318 = vmatpush.msra.mxu3 %v217_v42 }
  0x35   :  { %247 = vmatpush.msrb.mxu1 %v216_v48 }
  0x36   :  { %319 = vmatpush.msra.mxu3 %v216_v48 }
  0x37   :  { %248 = vmatpush.msrb.mxu1 %v215_v49 }
  0x38   :  { %320 = vmatpush.msra.mxu3 %v215_v49 }
  0x39   :  { %249 = vmatpush.msrb.mxu1 %v214_v50 }
  0x3a   :  { %321 = vmatpush.msra.mxu3 %v214_v50 }
  0x91   :  { %v122_v33 = vpop.f32.mrf.mxu0 }
  0x92   :  { %v155_v36 = vpop.f32.mrf.mxu1 }
  0x93   :  { %v156_v37 = vadd.f32 %v155_v36, %v122_v33 }
  0x95   :  { %v165_v39 = vadd.f32 %v327_v34, %v156_v37 }
  0x97   :  { %v167_v41 = vmax.f32 %v165_v39, 0.0 }
  0x99   :  { %v125_v43 = vpop.f32.mrf.mxu0  ;;  %205 = vmatmul.f32.vlgmr.msrb.gmra.mxu0 %v167_v41 }
  0x9a   :  { %v158_v44 = vpop.f32.mrf.mxu1 }
  0x9b   :  { %v159_v45 = vadd.f32 %v158_v44, %v125_v43 }
  0x9d   :  { %v166_v46 = vadd.f32 %v327_v34, %v159_v45 }
  0x9f   :  { %v168_v47 = vmax.f32 %v166_v46, 0.0 }
  0xa1   :  { %208 = vmatmul.f32.vlgmr.msra.gmra.mxu2 %v168_v47 }
 0x116   :  { %v206_v52 = vpop.f32.mrf.mxu0 }
 0x117   :  { %v207_v53 = vadd.f32 %v328_v51, %v206_v52 }
 0x119   :  { %v212_v54 = vmax.f32 %v207_v53, 0.0 }
 0x11b   :  { %250 = vmatmul.f32.vlgmr.msrb.gmra.mxu1 %v212_v54 }
 0x124   :  { %v209_v55 = vpop.f32.mrf.mxu2 }
 0x125   :  { %v210_v56 = vadd.f32 %v328_v51, %v209_v55 }
 0x127   :  { %v213_v57 = vmax.f32 %v210_v56, 0.0 }
 0x129   :  { %253 = vmatmul.f32.vlgmr.msra.gmra.mxu3 %v213_v57 }
 0x198   :  { %v251_v59 = vpop.f32.mrf.mxu1 }
 0x199   :  { %v252_v60 = vadd.f32 %v329_v58, %v251_v59 }
 0x19b   :  { %v257_v62 = vmax.f32 %v252_v60, 0.0 }
 0x19d   :  { %v263_v63 = vmul.f32 %v330_v61, %v257_v62 }
 0x19f   :  { %265 = vadd.xlane.f32.xlu0 %v263_v63 }
 0x1ac   :  { %v254_v0 = vpop.f32.mrf.mxu3 }
 0x1ad   :  { %v255_v1 = vadd.f32 %v329_v58, %v254_v0 }
 0x1af   :  { %v258_v2 = vmax.f32 %v255_v1, 0.0 }
 0x1b1   :  { %v264_v3 = vmul.f32 %v330_v61, %v258_v2 }
 0x1b3   :  { %267 = vadd.xlane.f32.xlu0 %v264_v3 }
 0x212   :  { %v266_v5 = vpop.xlane.xlu0 %265 }
 0x213   :  { %v273_v6 = vadd.f32 %v331_v4, %v266_v5 }
 0x215   :  { %276 = vst.msk [vmem:[%s533_s11] sm:$0xff] %vm275_vm3, %v273_v6 }
 0x226   :  { %v268_v7 = vpop.xlane.xlu0 %267 }
 0x227   :  { %v274_v8 = vadd.f32 %v331_v4, %v268_v7 }
 0x229   :  { %277 = vst.msk [vmem:[%s533_s11 + $0x8] sm:$0xff] %vm275_vm3, %v274_v8 }
 0x22a   :  { %282 = vsyncpa [#allocation4], 1 }
 0x22b   :  { %283 = vsyncpa [#allocation6], 1 }

</bundles_post_ra>
